<compile_context>
chip_gen: v7x
topology: tpu7x:2x2x1
jax: 0.10.0
libtpu: 0.0.40
codegen_flags: <defaults>
</compile_context>

<pallas_src>
import functools

import jax
import jax.numpy as jnp
from jax.experimental import pallas as pl
from jax.experimental.pallas import tpu as pltpu


# ----------------------------------------------------------------------------
# Fused kernel: conv3x3(s1,p0)+ReLU -> conv3x3(s1,p0)+ReLU, whole batch in one
# grid step.  Each conv = k matmuls on lane-merged (W*C) rows.
# ----------------------------------------------------------------------------
def _fused_conv_kernel(x_ref, w1_ref, b1_ref, w2_ref, b2_ref, o_ref, h1_ref,
                       *, batch, k1, k2, oh1, oh2, n1, n2):
    # x_ref : [B, H, W*C0]          input, lane-merged (64 lanes)
    # w1_ref: [K1, W*C0, OW1*C1]    banded per-kh weights (112 lanes)
    # b1_ref: [1, OW1*C1]
    # w2_ref: [K2, OW1*C1, OW2*C2]  banded per-kh weights (192 lanes)
    # b2_ref: [1, OW2*C2]
    # o_ref : [B, OH2, OW2*C2]
    # h1_ref: VMEM scratch [OH1, OW1*C1] — layer-1 activation, never in HBM
    for b in range(batch):
        # ---- layer 1: Conv2d(C0->C1) + ReLU, one matmul per vertical tap ----
        acc = jnp.broadcast_to(b1_ref[...], (oh1, n1))          # bias as init
        for kh in range(k1):
            lhs = x_ref[b, kh:kh + oh1, :]                      # [OH1, W*C0]
            acc = acc + jnp.dot(lhs, w1_ref[kh],
                                preferred_element_type=jnp.float32)
        h1_ref[...] = jnp.maximum(acc, 0.0)                     # stays in VMEM

        # ---- layer 2: Conv2d(C1->C2) + ReLU -------------------------------
        acc = jnp.broadcast_to(b2_ref[...], (oh2, n2))
        for kh in range(k2):
            lhs = h1_ref[kh:kh + oh2, :]                        # [OH2, OW1*C1]
            acc = acc + jnp.dot(lhs, w2_ref[kh],
                                preferred_element_type=jnp.float32)
        o_ref[b] = jnp.maximum(acc, 0.0).astype(o_ref.dtype)


# ----------------------------------------------------------------------------
# Banded weight construction (wrapper-side, traced once).
# For an input row in merged (W*C_in) layout, banded[kh] is the matrix such
# that  row @ banded[kh]  yields the kh-tap contribution of a valid stride-1
# conv for *all* output columns at once, in merged (W_out*C_out) layout.
# ----------------------------------------------------------------------------
def _banded_conv_weight(w, w_in):
    # w: [OC, IC, K, K] (PyTorch OIHW)
    oc, ic, k, _ = w.shape
    w_out = w_in - k + 1
    w_t = jnp.transpose(w, (2, 3, 1, 0))                        # [K, K, IC, OC]
    wi = jnp.arange(w_in)[None, :, None]
    ow = jnp.arange(w_out)[None, None, :]
    kw = jnp.arange(k)[:, None, None]
    shift = (wi == ow + kw).astype(w.dtype)                     # [K, w_in, w_out]
    # banded6[kh, wi, c, ow, c'] = w[c', c, kh, wi-ow] if 0 <= wi-ow < K else 0
    banded6 = jnp.einsum('awv,hacd->hwcvd', shift, w_t)
    return banded6.reshape(k, w_in * ic, w_out * oc)


# ----------------------------------------------------------------------------
# Wrapper: single pallas_call for the whole forward.
# ----------------------------------------------------------------------------
def conv2d_model_forward(x_nchw, params, strides, paddings):
    """Fused forward for the 2-layer (conv k3 s1 p0 + ReLU) Conv2dModel config."""
    assert len(params) == 2, "fused kernel implements the 2-layer config"
    assert all(s == 1 for s in strides), "TODO(synk): stride > 1 not implemented"
    assert all(p == 0 for p in paddings), "TODO(synk): padding > 0 not implemented"

    (w1, b1), (w2, b2) = params
    B, C0, H, W = x_nchw.shape
    OC1, _, K1, _ = w1.shape
    OC2, _, K2, _ = w2.shape
    OH1, OW1 = H - K1 + 1, W - K1 + 1
    OH2, OW2 = OH1 - K2 + 1, OW1 - K2 + 1
    N1, N2 = OW1 * OC1, OW2 * OC2

    # Layout plumbing in plain JAX: one transpose in, one out.
    x_m = jnp.transpose(x_nchw, (0, 2, 3, 1)).reshape(B, H, W * C0)
    w1_b = _banded_conv_weight(w1, W)        # [K1, W*C0,   OW1*OC1]
    w2_b = _banded_conv_weight(w2, OW1)      # [K2, OW1*OC1, OW2*OC2]
    b1_r = jnp.tile(b1, OW1).reshape(1, N1)
    b2_r = jnp.tile(b2, OW2).reshape(1, N2)

    kernel = functools.partial(
        _fused_conv_kernel,
        batch=B, k1=K1, k2=K2, oh1=OH1, oh2=OH2, n1=N1, n2=N2)

    flops = 2 * B * (OH1 * OW1 * K1 * K1 * C0 * OC1
                     + OH2 * OW2 * K2 * K2 * OC1 * OC2)
    bytes_accessed = 4 * (x_m.size + w1_b.size + w2_b.size
                          + b1_r.size + b2_r.size + B * OH2 * N2)

    out_m = pl.pallas_call(
        kernel,
        out_shape=jax.ShapeDtypeStruct((B, OH2, N2), x_nchw.dtype),
        grid=(1,),                                   # single step, B folded in
        in_specs=[
            pl.BlockSpec((B, H, W * C0), lambda i: (0, 0, 0)),
            pl.BlockSpec((K1, W * C0, N1), lambda i: (0, 0, 0)),
            pl.BlockSpec((1, N1), lambda i: (0, 0)),
            pl.BlockSpec((K2, N1, N2), lambda i: (0, 0, 0)),
            pl.BlockSpec((1, N2), lambda i: (0, 0)),
        ],
        out_specs=pl.BlockSpec((B, OH2, N2), lambda i: (0, 0, 0)),
        scratch_shapes=[pltpu.VMEM((OH1, N1), jnp.float32)],
        compiler_params=pltpu.CompilerParams(
            dimension_semantics=("arbitrary",)),
        cost_estimate=pl.CostEstimate(flops=flops, transcendentals=0,
                                      bytes_accessed=bytes_accessed),
    )(x_m, w1_b, b1_r, w2_b, b2_r)

    # Merged-lane output -> NCHW (wrapper-side layout plumbing).
    out = out_m.reshape(B, OH2, OW2, OC2)
    return jnp.transpose(out, (0, 3, 1, 2))


# ----------------------------------------------------------------------------
# Deterministic parameter init (PyTorch-like uniform(-1/sqrt(fan_in), +))
# ----------------------------------------------------------------------------
def init_params(key, in_channels, channels, kernel_sizes):
    params = []
    ics = [in_channels] + list(channels[:-1])
    for ic, oc, k in zip(ics, channels, kernel_sizes):
        key, kw_key, kb_key = jax.random.split(key, 3)
        fan_in = ic * k * k
        bound = 1.0 / jnp.sqrt(jnp.float32(fan_in))
        w = jax.random.uniform(kw_key, (oc, ic, k, k), jnp.float32,
                               minval=-bound, maxval=bound)
        b = jax.random.uniform(kb_key, (oc,), jnp.float32,
                               minval=-bound, maxval=bound)
        params.append((w, b))
    return params


# ----------------------------------------------------------------------------
# Reference in plain JAX (quiet sanity check)
# ----------------------------------------------------------------------------
def reference_forward(x, params, strides, paddings):
    h = x
    for (w, b), s, p in zip(params, strides, paddings):
        h = jax.lax.conv_general_dilated(
            h, w, window_strides=(s, s), padding=[(p, p), (p, p)],
            dimension_numbers=("NCHW", "OIHW", "NCHW"))
        h = jax.nn.relu(h + b[None, :, None, None])
    return h


if __name__ == "__main__":
    # Model config
    in_channels = 4
    channels = [8, 16]
    kernel_sizes = [3, 3]
    strides = [1, 1]
    paddings = [0, 0]

    key = jax.random.PRNGKey(0)
    key, xkey = jax.random.split(key)
    x = jax.random.normal(xkey, (2, 4, 16, 16), jnp.float32)   # [B, C, H, W]

    params = init_params(key, in_channels, channels, kernel_sizes)

    fwd = jax.jit(functools.partial(
        conv2d_model_forward, strides=strides, paddings=paddings))
    out = fwd(x, params)
    out = jax.block_until_ready(out)

    # Sanity check against lax conv reference
    ref = reference_forward(x, params, strides, paddings)
    assert out.shape == (2, 16, 12, 12), out.shape
    assert jnp.allclose(out, ref, atol=1e-4, rtol=1e-4), "mismatch vs reference"

    print("KERNEL_OK")
</pallas_src>

<mosaic_0001>
module attributes {stable_mosaic.version = 11 : i64} {
  func.func @_fused_conv_kernel(%arg0: i32, %arg1: memref<2x16x64xf32, #tpu.memory_space<vmem>>, %arg2: memref<3x64x112xf32, #tpu.memory_space<vmem>>, %arg3: memref<1x112xf32, #tpu.memory_space<vmem>>, %arg4: memref<3x112x192xf32, #tpu.memory_space<vmem>>, %arg5: memref<1x192xf32, #tpu.memory_space<vmem>>, %arg6: memref<2x12x192xf32, #tpu.memory_space<vmem>>, %arg7: memref<14x112xf32, #tpu.memory_space<vmem>>) attributes {dimension_semantics = [#tpu.dimension_semantics<arbitrary>], iteration_bounds = array<i64: 1>, scalar_prefetch = 0 : i64, scratch_operands = 1 : i64, tpu.core_type = #tpu.core_type<tc>, window_params = [{pipeline_mode = #tpu.pipeline_mode<synchronous>, transform_indices = @transform_0, window_bounds = array<i64: 2, 16, 64>}, {pipeline_mode = #tpu.pipeline_mode<synchronous>, transform_indices = @transform_1, window_bounds = array<i64: 3, 64, 112>}, {pipeline_mode = #tpu.pipeline_mode<synchronous>, transform_indices = @transform_2, window_bounds = array<i64: 1, 112>}, {pipeline_mode = #tpu.pipeline_mode<synchronous>, transform_indices = @transform_3, window_bounds = array<i64: 3, 112, 192>}, {pipeline_mode = #tpu.pipeline_mode<synchronous>, transform_indices = @transform_4, window_bounds = array<i64: 1, 192>}, {pipeline_mode = #tpu.pipeline_mode<synchronous>, transform_indices = @transform_5, window_bounds = array<i64: 2, 12, 192>}]} {
    %c0 = arith.constant 0 : index
    %c0_0 = arith.constant 0 : index
    %0 = vector.load %arg3[%c0, %c0_0] : memref<1x112xf32, #tpu.memory_space<vmem>>, vector<1x112xf32>
    %1 = vector.shape_cast %0 : vector<1x112xf32> to vector<1x112xf32>
    %2 = vector.broadcast %1 : vector<1x112xf32> to vector<14x112xf32>
    %c0_1 = arith.constant 0 : index
    %c0_2 = arith.constant 0 : index
    %c0_3 = arith.constant 0 : index
    %3 = vector.load %arg1[%c0_1, %c0_2, %c0_3] : memref<2x16x64xf32, #tpu.memory_space<vmem>>, vector<1x14x64xf32>
    %4 = vector.shape_cast %3 : vector<1x14x64xf32> to vector<14x64xf32>
    %c0_4 = arith.constant 0 : index
    %c0_5 = arith.constant 0 : index
    %c0_6 = arith.constant 0 : index
    %5 = vector.load %arg2[%c0_4, %c0_5, %c0_6] : memref<3x64x112xf32, #tpu.memory_space<vmem>>, vector<1x64x112xf32>
    %6 = vector.shape_cast %5 : vector<1x64x112xf32> to vector<64x112xf32>
    %cst = arith.constant dense<0.000000e+00> : vector<14x112xf32>
    %7 = tpu.matmul %4, %6, %cst {dimension_numbers = #tpu.dot_dimension_numbers<[1], [0], [0], [1], [0, 0, 1, 1], [], []>} : vector<14x64xf32>, vector<64x112xf32>, vector<14x112xf32> -> vector<14x112xf32>
    %8 = arith.addf %2, %7 : vector<14x112xf32>
    %c0_7 = arith.constant 0 : index
    %c1 = arith.constant 1 : index
    %c0_8 = arith.constant 0 : index
    %9 = vector.load %arg1[%c0_7, %c1, %c0_8] : memref<2x16x64xf32, #tpu.memory_space<vmem>>, vector<1x14x64xf32>
    %10 = vector.shape_cast %9 : vector<1x14x64xf32> to vector<14x64xf32>
    %c1_9 = arith.constant 1 : index
    %c0_10 = arith.constant 0 : index
    %c0_11 = arith.constant 0 : index
    %11 = vector.load %arg2[%c1_9, %c0_10, %c0_11] : memref<3x64x112xf32, #tpu.memory_space<vmem>>, vector<1x64x112xf32>
    %12 = vector.shape_cast %11 : vector<1x64x112xf32> to vector<64x112xf32>
    %cst_12 = arith.constant dense<0.000000e+00> : vector<14x112xf32>
    %13 = tpu.matmul %10, %12, %cst_12 {dimension_numbers = #tpu.dot_dimension_numbers<[1], [0], [0], [1], [0, 0, 1, 1], [], []>} : vector<14x64xf32>, vector<64x112xf32>, vector<14x112xf32> -> vector<14x112xf32>
    %14 = arith.addf %8, %13 : vector<14x112xf32>
    %c0_13 = arith.constant 0 : index
    %c2 = arith.constant 2 : index
    %c0_14 = arith.constant 0 : index
    %15 = vector.load %arg1[%c0_13, %c2, %c0_14] : memref<2x16x64xf32, #tpu.memory_space<vmem>>, vector<1x14x64xf32>
    %16 = vector.shape_cast %15 : vector<1x14x64xf32> to vector<14x64xf32>
    %c2_15 = arith.constant 2 : index
    %c0_16 = arith.constant 0 : index
    %c0_17 = arith.constant 0 : index
    %17 = vector.load %arg2[%c2_15, %c0_16, %c0_17] : memref<3x64x112xf32, #tpu.memory_space<vmem>>, vector<1x64x112xf32>
    %18 = vector.shape_cast %17 : vector<1x64x112xf32> to vector<64x112xf32>
    %cst_18 = arith.constant dense<0.000000e+00> : vector<14x112xf32>
    %19 = tpu.matmul %16, %18, %cst_18 {dimension_numbers = #tpu.dot_dimension_numbers<[1], [0], [0], [1], [0, 0, 1, 1], [], []>} : vector<14x64xf32>, vector<64x112xf32>, vector<14x112xf32> -> vector<14x112xf32>
    %20 = arith.addf %14, %19 : vector<14x112xf32>
    %cst_19 = arith.constant 0.000000e+00 : f32
    %21 = vector.broadcast %cst_19 : f32 to vector<14x112xf32>
    %22 = arith.maximumf %20, %21 : vector<14x112xf32>
    %c0_20 = arith.constant 0 : index
    %c0_21 = arith.constant 0 : index
    %23 = vector.load %arg7[%c0_20, %c0_21] : memref<14x112xf32, #tpu.memory_space<vmem>>, vector<14x112xf32>
    tpu.vector_store %arg7[%c0_20, %c0_21], %22 {strides = array<i32>} : memref<14x112xf32, #tpu.memory_space<vmem>>, vector<14x112xf32>,
    %c0_22 = arith.constant 0 : index
    %c0_23 = arith.constant 0 : index
    %24 = vector.load %arg5[%c0_22, %c0_23] : memref<1x192xf32, #tpu.memory_space<vmem>>, vector<1x192xf32>
    %25 = vector.shape_cast %24 : vector<1x192xf32> to vector<1x192xf32>
    %26 = vector.broadcast %25 : vector<1x192xf32> to vector<12x192xf32>
    %c0_24 = arith.constant 0 : index
    %c0_25 = arith.constant 0 : index
    %27 = vector.load %arg7[%c0_24, %c0_25] : memref<14x112xf32, #tpu.memory_space<vmem>>, vector<12x112xf32>
    %c0_26 = arith.constant 0 : index
    %c0_27 = arith.constant 0 : index
    %c0_28 = arith.constant 0 : index
    %28 = vector.load %arg4[%c0_26, %c0_27, %c0_28] : memref<3x112x192xf32, #tpu.memory_space<vmem>>, vector<1x112x192xf32>
    %29 = vector.shape_cast %28 : vector<1x112x192xf32> to vector<112x192xf32>
    %cst_29 = arith.constant dense<0.000000e+00> : vector<12x192xf32>
    %30 = tpu.matmul %27, %29, %cst_29 {dimension_numbers = #tpu.dot_dimension_numbers<[1], [0], [0], [1], [0, 0, 1, 1], [], []>} : vector<12x112xf32>, vector<112x192xf32>, vector<12x192xf32> -> vector<12x192xf32>
    %31 = arith.addf %26, %30 : vector<12x192xf32>
    %c1_30 = arith.constant 1 : index
    %c0_31 = arith.constant 0 : index
    %32 = vector.load %arg7[%c1_30, %c0_31] : memref<14x112xf32, #tpu.memory_space<vmem>>, vector<12x112xf32>
    %c1_32 = arith.constant 1 : index
    %c0_33 = arith.constant 0 : index
    %c0_34 = arith.constant 0 : index
    %33 = vector.load %arg4[%c1_32, %c0_33, %c0_34] : memref<3x112x192xf32, #tpu.memory_space<vmem>>, vector<1x112x192xf32>
    %34 = vector.shape_cast %33 : vector<1x112x192xf32> to vector<112x192xf32>
    %cst_35 = arith.constant dense<0.000000e+00> : vector<12x192xf32>
    %35 = tpu.matmul %32, %34, %cst_35 {dimension_numbers = #tpu.dot_dimension_numbers<[1], [0], [0], [1], [0, 0, 1, 1], [], []>} : vector<12x112xf32>, vector<112x192xf32>, vector<12x192xf32> -> vector<12x192xf32>
    %36 = arith.addf %31, %35 : vector<12x192xf32>
    %c2_36 = arith.constant 2 : index
    %c0_37 = arith.constant 0 : index
    %37 = vector.load %arg7[%c2_36, %c0_37] : memref<14x112xf32, #tpu.memory_space<vmem>>, vector<12x112xf32>
    %c2_38 = arith.constant 2 : index
    %c0_39 = arith.constant 0 : index
    %c0_40 = arith.constant 0 : index
    %38 = vector.load %arg4[%c2_38, %c0_39, %c0_40] : memref<3x112x192xf32, #tpu.memory_space<vmem>>, vector<1x112x192xf32>
    %39 = vector.shape_cast %38 : vector<1x112x192xf32> to vector<112x192xf32>
    %cst_41 = arith.constant dense<0.000000e+00> : vector<12x192xf32>
    %40 = tpu.matmul %37, %39, %cst_41 {dimension_numbers = #tpu.dot_dimension_numbers<[1], [0], [0], [1], [0, 0, 1, 1], [], []>} : vector<12x112xf32>, vector<112x192xf32>, vector<12x192xf32> -> vector<12x192xf32>
    %41 = arith.addf %36, %40 : vector<12x192xf32>
    %cst_42 = arith.constant 0.000000e+00 : f32
    %42 = vector.broadcast %cst_42 : f32 to vector<12x192xf32>
    %43 = arith.maximumf %41, %42 : vector<12x192xf32>
    %c0_43 = arith.constant 0 : index
    %c0_44 = arith.constant 0 : index
    %c0_45 = arith.constant 0 : index
    %44 = vector.load %arg6[%c0_43, %c0_44, %c0_45] : memref<2x12x192xf32, #tpu.memory_space<vmem>>, vector<1x12x192xf32>
    %45 = vector.shape_cast %44 : vector<1x12x192xf32> to vector<12x192xf32>
    %46 = vector.shape_cast %43 : vector<12x192xf32> to vector<1x12x192xf32>
    tpu.vector_store %arg6[%c0_43, %c0_44, %c0_45], %46 {strides = array<i32>} : memref<2x12x192xf32, #tpu.memory_space<vmem>>, vector<1x12x192xf32>,
    %c0_46 = arith.constant 0 : index
    %c0_47 = arith.constant 0 : index
    %47 = vector.load %arg3[%c0_46, %c0_47] : memref<1x112xf32, #tpu.memory_space<vmem>>, vector<1x112xf32>
    %48 = vector.shape_cast %47 : vector<1x112xf32> to vector<1x112xf32>
    %49 = vector.broadcast %48 : vector<1x112xf32> to vector<14x112xf32>
    %c1_48 = arith.constant 1 : index
    %c0_49 = arith.constant 0 : index
    %c0_50 = arith.constant 0 : index
    %50 = vector.load %arg1[%c1_48, %c0_49, %c0_50] : memref<2x16x64xf32, #tpu.memory_space<vmem>>, vector<1x14x64xf32>
    %51 = vector.shape_cast %50 : vector<1x14x64xf32> to vector<14x64xf32>
    %c0_51 = arith.constant 0 : index
    %c0_52 = arith.constant 0 : index
    %c0_53 = arith.constant 0 : index
    %52 = vector.load %arg2[%c0_51, %c0_52, %c0_53] : memref<3x64x112xf32, #tpu.memory_space<vmem>>, vector<1x64x112xf32>
    %53 = vector.shape_cast %52 : vector<1x64x112xf32> to vector<64x112xf32>
    %cst_54 = arith.constant dense<0.000000e+00> : vector<14x112xf32>
    %54 = tpu.matmul %51, %53, %cst_54 {dimension_numbers = #tpu.dot_dimension_numbers<[1], [0], [0], [1], [0, 0, 1, 1], [], []>} : vector<14x64xf32>, vector<64x112xf32>, vector<14x112xf32> -> vector<14x112xf32>
    %55 = arith.addf %49, %54 : vector<14x112xf32>
    %c1_55 = arith.constant 1 : index
    %c1_56 = arith.constant 1 : index
    %c0_57 = arith.constant 0 : index
    %56 = vector.load %arg1[%c1_55, %c1_56, %c0_57] : memref<2x16x64xf32, #tpu.memory_space<vmem>>, vector<1x14x64xf32>
    %57 = vector.shape_cast %56 : vector<1x14x64xf32> to vector<14x64xf32>
    %c1_58 = arith.constant 1 : index
    %c0_59 = arith.constant 0 : index
    %c0_60 = arith.constant 0 : index
    %58 = vector.load %arg2[%c1_58, %c0_59, %c0_60] : memref<3x64x112xf32, #tpu.memory_space<vmem>>, vector<1x64x112xf32>
    %59 = vector.shape_cast %58 : vector<1x64x112xf32> to vector<64x112xf32>
    %cst_61 = arith.constant dense<0.000000e+00> : vector<14x112xf32>
    %60 = tpu.matmul %57, %59, %cst_61 {dimension_numbers = #tpu.dot_dimension_numbers<[1], [0], [0], [1], [0, 0, 1, 1], [], []>} : vector<14x64xf32>, vector<64x112xf32>, vector<14x112xf32> -> vector<14x112xf32>
    %61 = arith.addf %55, %60 : vector<14x112xf32>
    %c1_62 = arith.constant 1 : index
    %c2_63 = arith.constant 2 : index
    %c0_64 = arith.constant 0 : index
    %62 = vector.load %arg1[%c1_62, %c2_63, %c0_64] : memref<2x16x64xf32, #tpu.memory_space<vmem>>, vector<1x14x64xf32>
    %63 = vector.shape_cast %62 : vector<1x14x64xf32> to vector<14x64xf32>
    %c2_65 = arith.constant 2 : index
    %c0_66 = arith.constant 0 : index
    %c0_67 = arith.constant 0 : index
    %64 = vector.load %arg2[%c2_65, %c0_66, %c0_67] : memref<3x64x112xf32, #tpu.memory_space<vmem>>, vector<1x64x112xf32>
    %65 = vector.shape_cast %64 : vector<1x64x112xf32> to vector<64x112xf32>
    %cst_68 = arith.constant dense<0.000000e+00> : vector<14x112xf32>
    %66 = tpu.matmul %63, %65, %cst_68 {dimension_numbers = #tpu.dot_dimension_numbers<[1], [0], [0], [1], [0, 0, 1, 1], [], []>} : vector<14x64xf32>, vector<64x112xf32>, vector<14x112xf32> -> vector<14x112xf32>
    %67 = arith.addf %61, %66 : vector<14x112xf32>
    %cst_69 = arith.constant 0.000000e+00 : f32
    %68 = vector.broadcast %cst_69 : f32 to vector<14x112xf32>
    %69 = arith.maximumf %67, %68 : vector<14x112xf32>
    %c0_70 = arith.constant 0 : index
    %c0_71 = arith.constant 0 : index
    %70 = vector.load %arg7[%c0_70, %c0_71] : memref<14x112xf32, #tpu.memory_space<vmem>>, vector<14x112xf32>
    tpu.vector_store %arg7[%c0_70, %c0_71], %69 {strides = array<i32>} : memref<14x112xf32, #tpu.memory_space<vmem>>, vector<14x112xf32>,
    %c0_72 = arith.constant 0 : index
    %c0_73 = arith.constant 0 : index
    %71 = vector.load %arg5[%c0_72, %c0_73] : memref<1x192xf32, #tpu.memory_space<vmem>>, vector<1x192xf32>
    %72 = vector.shape_cast %71 : vector<1x192xf32> to vector<1x192xf32>
    %73 = vector.broadcast %72 : vector<1x192xf32> to vector<12x192xf32>
    %c0_74 = arith.constant 0 : index
    %c0_75 = arith.constant 0 : index
    %74 = vector.load %arg7[%c0_74, %c0_75] : memref<14x112xf32, #tpu.memory_space<vmem>>, vector<12x112xf32>
    %c0_76 = arith.constant 0 : index
    %c0_77 = arith.constant 0 : index
    %c0_78 = arith.constant 0 : index
    %75 = vector.load %arg4[%c0_76, %c0_77, %c0_78] : memref<3x112x192xf32, #tpu.memory_space<vmem>>, vector<1x112x192xf32>
    %76 = vector.shape_cast %75 : vector<1x112x192xf32> to vector<112x192xf32>
    %cst_79 = arith.constant dense<0.000000e+00> : vector<12x192xf32>
    %77 = tpu.matmul %74, %76, %cst_79 {dimension_numbers = #tpu.dot_dimension_numbers<[1], [0], [0], [1], [0, 0, 1, 1], [], []>} : vector<12x112xf32>, vector<112x192xf32>, vector<12x192xf32> -> vector<12x192xf32>
    %78 = arith.addf %73, %77 : vector<12x192xf32>
    %c1_80 = arith.constant 1 : index
    %c0_81 = arith.constant 0 : index
    %79 = vector.load %arg7[%c1_80, %c0_81] : memref<14x112xf32, #tpu.memory_space<vmem>>, vector<12x112xf32>
    %c1_82 = arith.constant 1 : index
    %c0_83 = arith.constant 0 : index
    %c0_84 = arith.constant 0 : index
    %80 = vector.load %arg4[%c1_82, %c0_83, %c0_84] : memref<3x112x192xf32, #tpu.memory_space<vmem>>, vector<1x112x192xf32>
    %81 = vector.shape_cast %80 : vector<1x112x192xf32> to vector<112x192xf32>
    %cst_85 = arith.constant dense<0.000000e+00> : vector<12x192xf32>
    %82 = tpu.matmul %79, %81, %cst_85 {dimension_numbers = #tpu.dot_dimension_numbers<[1], [0], [0], [1], [0, 0, 1, 1], [], []>} : vector<12x112xf32>, vector<112x192xf32>, vector<12x192xf32> -> vector<12x192xf32>
    %83 = arith.addf %78, %82 : vector<12x192xf32>
    %c2_86 = arith.constant 2 : index
    %c0_87 = arith.constant 0 : index
    %84 = vector.load %arg7[%c2_86, %c0_87] : memref<14x112xf32, #tpu.memory_space<vmem>>, vector<12x112xf32>
    %c2_88 = arith.constant 2 : index
    %c0_89 = arith.constant 0 : index
    %c0_90 = arith.constant 0 : index
    %85 = vector.load %arg4[%c2_88, %c0_89, %c0_90] : memref<3x112x192xf32, #tpu.memory_space<vmem>>, vector<1x112x192xf32>
    %86 = vector.shape_cast %85 : vector<1x112x192xf32> to vector<112x192xf32>
    %cst_91 = arith.constant dense<0.000000e+00> : vector<12x192xf32>
    %87 = tpu.matmul %84, %86, %cst_91 {dimension_numbers = #tpu.dot_dimension_numbers<[1], [0], [0], [1], [0, 0, 1, 1], [], []>} : vector<12x112xf32>, vector<112x192xf32>, vector<12x192xf32> -> vector<12x192xf32>
    %88 = arith.addf %83, %87 : vector<12x192xf32>
    %cst_92 = arith.constant 0.000000e+00 : f32
    %89 = vector.broadcast %cst_92 : f32 to vector<12x192xf32>
    %90 = arith.maximumf %88, %89 : vector<12x192xf32>
    %c1_93 = arith.constant 1 : index
    %c0_94 = arith.constant 0 : index
    %c0_95 = arith.constant 0 : index
    %91 = vector.load %arg6[%c1_93, %c0_94, %c0_95] : memref<2x12x192xf32, #tpu.memory_space<vmem>>, vector<1x12x192xf32>
    %92 = vector.shape_cast %91 : vector<1x12x192xf32> to vector<12x192xf32>
    %93 = vector.shape_cast %90 : vector<12x192xf32> to vector<1x12x192xf32>
    tpu.vector_store %arg6[%c1_93, %c0_94, %c0_95], %93 {strides = array<i32>} : memref<2x12x192xf32, #tpu.memory_space<vmem>>, vector<1x12x192xf32>,
    return
  }
  func.func @transform_0(%arg0: i32) -> (i32, i32, i32) {
    %c0_i32 = arith.constant 0 : i32
    %c0_i32_0 = arith.constant 0 : i32
    %c0_i32_1 = arith.constant 0 : i32
    %c0_i32_2 = arith.constant 0 : i32
    return %c0_i32, %c0_i32_0, %c0_i32_1 : i32, i32, i32
  }
  func.func @transform_1(%arg0: i32) -> (i32, i32, i32) {
    %c0_i32 = arith.constant 0 : i32
    %c0_i32_0 = arith.constant 0 : i32
    %c0_i32_1 = arith.constant 0 : i32
    %c0_i32_2 = arith.constant 0 : i32
    return %c0_i32, %c0_i32_0, %c0_i32_1 : i32, i32, i32
  }
  func.func @transform_2(%arg0: i32) -> (i32, i32) {
    %c0_i32 = arith.constant 0 : i32
    %c0_i32_0 = arith.constant 0 : i32
    %c0_i32_1 = arith.constant 0 : i32
    return %c0_i32, %c0_i32_0 : i32, i32
  }
  func.func @transform_3(%arg0: i32) -> (i32, i32, i32) {
    %c0_i32 = arith.constant 0 : i32
    %c0_i32_0 = arith.constant 0 : i32
    %c0_i32_1 = arith.constant 0 : i32
    %c0_i32_2 = arith.constant 0 : i32
    return %c0_i32, %c0_i32_0, %c0_i32_1 : i32, i32, i32
  }
  func.func @transform_4(%arg0: i32) -> (i32, i32) {
    %c0_i32 = arith.constant 0 : i32
    %c0_i32_0 = arith.constant 0 : i32
    %c0_i32_1 = arith.constant 0 : i32
    return %c0_i32, %c0_i32_0 : i32, i32
  }
  func.func @transform_5(%arg0: i32) -> (i32, i32, i32) {
    %c0_i32 = arith.constant 0 : i32
    %c0_i32_0 = arith.constant 0 : i32
    %c0_i32_1 = arith.constant 0 : i32
    %c0_i32_2 = arith.constant 0 : i32
    return %c0_i32, %c0_i32_0, %c0_i32_1 : i32, i32, i32
  }
}

</mosaic_0001>

<bundles_post_ra>
// kernel: tile.18
= control target key start
LH: loop header
LB: loop body
LE: loop exit
PB: predicated region body
PF: predicated region fallthrough
CT: control target
= control target key end

     0   :  { %s28_s0 = inlined_call_operand.vmem [shape: f32[16], index: 0, kind: input, shape index: {}]   ;;  %s29_s1 = inlined_call_operand.vmem [shape: f32[12,16], index: 1, kind: output, shape index: {}]  }
   0x1   :  { %v4_v0 = vld [vmem:[%s28_s0] ss:$0 sm:$0xff] }
   0x2   :  { %5 = vst [vmem:[%s29_s1] sm:$0xff] %v4_v0  ;;  %8 = vst [vmem:[%s29_s1 + $0x8] sm:$0xff] %v4_v0 }

// kernel: tile.19
= control target key start
LH: loop header
LB: loop body
LE: loop exit
PB: predicated region body
PF: predicated region fallthrough
CT: control target
= control target key end

     0   :  { %s77_s10 = smov 112   ;;  %s78_s11 = smov 80   ;;  %vm4_vm0 = vcmask 130048   ;;  %vm10_vm1 = vcmask 1048448   ;;  %vm16_vm2 = vcmask 917248   ;;  %vm22_vm3 = vcmask 786048   ;;  %s124_s0 = inlined_call_operand.vmem [shape: f32[12,16], index: 0, kind: input, shape index: {}]   ;;  %s125_s1 = inlined_call_operand.vmem [shape: f32[1,192], index: 1, kind: output, shape index: {}]  }
   0x1   :  { %v62_v0 = vld [vmem:[%s124_s0 + $0x7] sm:$0x1]   ;;  %v64_v1 = vld [vmem:[%s124_s0 + $0x5] sm:$0x1]   ;;  %v63_v2 = vld [vmem:[%s124_s0 + $0x6] sm:$0x1]  }
   0x2   :  { %8 = vrot.lane.b32.xlu0 %v62_v0, %s77_s10  ;;  %20 = vrot.lane.b32.xlu1 %v64_v1, %s78_s11  ;;  %v65_v3 = vld [vmem:[%s124_s0 + $0x4] sm:$0x1]   ;;  %s31_s16 = smov 3  ;;  %s38_s17 = smov 3  ;;  %vm28_vm4 = vcmask 654848   ;;  %vm35_vm5 = vcmask 523648  }
   0x3   :  { %s79_s18 = smov 96   ;;  %s80_s19 = smov 64   ;;  %v66_v4 = vld [vmem:[%s124_s0 + $0x3] ss:$8 sm:%s31_s16]   ;;  %v67_v5 = vld [vmem:[%s124_s0 + $0x2] ss:$8 sm:%s38_s17]  }
   0x4   :  { %s2_s22 = smov 3  ;;  %s45_s27 = smov 3  ;;  %vm42_vm6 = vcmask 392448   ;;  %vm49_vm7 = vcmask 261248  }
   0x5   :  { %v3_v6 = vld [vmem:[%s124_s0] ss:$8 sm:%s2_s22]   ;;  %s81_s28 = smov 48   ;;  %s82_s29 = smov 32   ;;  %v68_v7 = vld [vmem:[%s124_s0 + $0x1] ss:$8 sm:%s45_s27]  }
   0x6   :  { %14 = vrot.lane.b32.xlu0 %v63_v2, %s79_s18  ;;  %26 = vrot.lane.b32.xlu1 %v65_v3, %s80_s19  ;;  %5 = vst.msk [vmem:[#allocation0] ss:$8 sm:$0x3] %vm4_vm0, %v3_v6   ;;  %s83_s0 = smov 16  }
   0xa   :  { %33 = vrot.lane.b32.xlu0 %v66_v4, %s81_s28  ;;  %40 = vrot.lane.b32.xlu1 %v67_v5, %s82_s29 }
   0xe   :  { %47 = vrot.lane.b32.xlu0 %v68_v7, %s83_s0 }
  0x74   :  { %v9_v8 = vpop.permute.xlu0 %8   ;;  %v21_v9 = vpop.permute.xlu1 %20  }
  0x75   :  { %11 = vst.msk [vmem:[#allocation0] sm:$0x1] %vm10_vm1, %v9_v8  }
  0x78   :  { %v15_v10 = vpop.permute.xlu0 %14   ;;  %v27_v11 = vpop.permute.xlu1 %26  }
  0x79   :  { %17 = vst.msk [vmem:[#allocation0] sm:$0x1] %vm16_vm2, %v15_v10  }
  0x7a   :  { %23 = vst.msk [vmem:[#allocation0] sm:$0x1] %vm22_vm3, %v21_v9  }
  0x7b   :  { %29 = vst.msk [vmem:[#allocation0] sm:$0x1] %vm28_vm4, %v27_v11  }
  0x7c   :  { %v34_v12 = vpop.permute.xlu0 %33   ;;  %v41_v13 = vpop.permute.xlu1 %40  }
  0x7d   :  { %36 = vst.msk [vmem:[#allocation0] ss:$8 sm:$0x3] %vm35_vm5, %v34_v12  }
  0x7e   :  { %43 = vst.msk [vmem:[#allocation0] ss:$8 sm:$0x3] %vm42_vm6, %v41_v13  }
  0x80   :  { %v48_v14 = vpop.permute.xlu0 %47  }
  0x81   :  { %50 = vst.msk [vmem:[#allocation0] ss:$8 sm:$0x3] %vm49_vm7, %v48_v14  }
  0x88   :  { %v54_v15 = vld [vmem:[#allocation0] sm:$0x1]  ;;  %v58_v16 = vld [vmem:[#allocation0 + $0x8] sm:$0x1] }
  0x89   :  { %56 = vst [vmem:[%s125_s1] sm:$0x1] %v54_v15  ;;  %69 = vst [vmem:[%s125_s1 + $0x1] sm:$0x1] %v58_v16 }

// kernel: tile.13
= control target key start
LH: loop header
LB: loop body
LE: loop exit
PB: predicated region body
PF: predicated region fallthrough
CT: control target
= control target key end

     0   :  { %s28_s0 = inlined_call_operand.vmem [shape: f32[8], index: 0, kind: input, shape index: {}]   ;;  %s29_s1 = inlined_call_operand.vmem [shape: f32[14,8], index: 1, kind: output, shape index: {}]  }
   0x1   :  { %v4_v0 = vld [vmem:[%s28_s0] ss:$0 sm:$0xff] }
   0x2   :  { %5 = vst [vmem:[%s29_s1] sm:$0xff] %v4_v0  ;;  %8 = vst [vmem:[%s29_s1 + $0x8] sm:$0xff] %v4_v0 }

// kernel: tile.14
= control target key start
LH: loop header
LB: loop body
LE: loop exit
PB: predicated region body
PF: predicated region fallthrough
CT: control target
= control target key end

     0   :  { %s115_s10 = smov 104   ;;  %s116_s11 = smov 88   ;;  %vm3_vm0 = vcmask 64512   ;;  %vm9_vm1 = vcmask 917312   ;;  %vm15_vm2 = vcmask 851712   ;;  %vm21_vm3 = vcmask 786112   ;;  %s183_s0 = inlined_call_operand.vmem [shape: f32[14,8], index: 0, kind: input, shape index: {}]   ;;  %s184_s1 = inlined_call_operand.vmem [shape: f32[1,112], index: 1, kind: output, shape index: {}]  }
   0x1   :  { %v89_v0 = vld [vmem:[%s183_s0 + $0xd] sm:$0x1]   ;;  %v91_v1 = vld [vmem:[%s183_s0 + $0xb] sm:$0x1]   ;;  %v90_v2 = vld [vmem:[%s183_s0 + $0xc] sm:$0x1]  }
   0x2   :  { %7 = vrot.lane.b32.xlu0 %v89_v0, %s115_s10  ;;  %19 = vrot.lane.b32.xlu1 %v91_v1, %s116_s11  ;;  %v92_v3 = vld [vmem:[%s183_s0 + $0xa] sm:$0x1]   ;;  %s117_s16 = smov 96   ;;  %s118_s17 = smov 80   ;;  %v93_v4 = vld [vmem:[%s183_s0 + $0x9] sm:$0x1]  }
   0x3   :  { %v94_v5 = vld [vmem:[%s183_s0 + $0x8] sm:$0x1]   ;;  %v2_v6 = vld [vmem:[%s183_s0] sm:$0x1]   ;;  %s119_s24 = smov 72   ;;  %s120_s25 = smov 64  }
   0x4   :  { %4 = vst.msk [vmem:[#allocation0] sm:$0x1] %vm3_vm0, %v2_v6   ;;  %v95_v7 = vld [vmem:[%s183_s0 + $0x7] sm:$0x1]   ;;  %v96_v8 = vld [vmem:[%s183_s0 + $0x6] sm:$0x1]  }
   0x5   :  { %s121_s30 = smov 56   ;;  %s122_s2 = smov 48   ;;  %v97_v9 = vld [vmem:[%s183_s0 + $0x5] sm:$0x1]   ;;  %v98_v10 = vld [vmem:[%s183_s0 + $0x4] sm:$0x1]  }
   0x6   :  { %13 = vrot.lane.b32.xlu0 %v90_v2, %s117_s16  ;;  %25 = vrot.lane.b32.xlu1 %v92_v3, %s118_s17  ;;  %s123_s7 = smov 40   ;;  %s124_s8 = smov 32   ;;  %v99_v11 = vld [vmem:[%s183_s0 + $0x3] sm:$0x1]   ;;  %v100_v12 = vld [vmem:[%s183_s0 + $0x2] sm:$0x1]  }
   0x7   :  { %s125_s13 = smov 24   ;;  %s126_s14 = smov 16   ;;  %v101_v13 = vld [vmem:[%s183_s0 + $0x1] sm:$0x1]   ;;  %vm27_vm4 = vcmask 720512   ;;  %vm33_vm5 = vcmask 654912  }
   0x8   :  { %s127_s0 = smov 8   ;;  %vm39_vm6 = vcmask 589312   ;;  %vm45_vm7 = vcmask 523712   ;;  %vm51_vm8 = vcmask 458112   ;;  %vm57_vm9 = vcmask 392512  }
   0x9   :  { %vm63_vm10 = vcmask 326912   ;;  %vm69_vm11 = vcmask 261312   ;;  %vm75_vm12 = vcmask 195712   ;;  %vm81_vm13 = vcmask 130112  }
   0xa   :  { %31 = vrot.lane.b32.xlu0 %v93_v4, %s119_s24  ;;  %37 = vrot.lane.b32.xlu1 %v94_v5, %s120_s25 }
   0xe   :  { %43 = vrot.lane.b32.xlu0 %v95_v7, %s121_s30  ;;  %49 = vrot.lane.b32.xlu1 %v96_v8, %s122_s2 }
  0x12   :  { %55 = vrot.lane.b32.xlu0 %v97_v9, %s123_s7  ;;  %61 = vrot.lane.b32.xlu1 %v98_v10, %s124_s8 }
  0x16   :  { %67 = vrot.lane.b32.xlu0 %v99_v11, %s125_s13  ;;  %73 = vrot.lane.b32.xlu1 %v100_v12, %s126_s14 }
  0x1a   :  { %79 = vrot.lane.b32.xlu0 %v101_v13, %s127_s0 }
  0x74   :  { %v8_v14 = vpop.permute.xlu0 %7   ;;  %v20_v15 = vpop.permute.xlu1 %19  }
  0x75   :  { %10 = vst.msk [vmem:[#allocation0] sm:$0x1] %vm9_vm1, %v8_v14  }
  0x78   :  { %v14_v16 = vpop.permute.xlu0 %13   ;;  %v26_v17 = vpop.permute.xlu1 %25  }
  0x79   :  { %16 = vst.msk [vmem:[#allocation0] sm:$0x1] %vm15_vm2, %v14_v16  }
  0x7a   :  { %22 = vst.msk [vmem:[#allocation0] sm:$0x1] %vm21_vm3, %v20_v15  }
  0x7b   :  { %28 = vst.msk [vmem:[#allocation0] sm:$0x1] %vm27_vm4, %v26_v17  }
  0x7c   :  { %v32_v18 = vpop.permute.xlu0 %31   ;;  %v38_v19 = vpop.permute.xlu1 %37  }
  0x7d   :  { %34 = vst.msk [vmem:[#allocation0] sm:$0x1] %vm33_vm5, %v32_v18  }
  0x7e   :  { %40 = vst.msk [vmem:[#allocation0] sm:$0x1] %vm39_vm6, %v38_v19  }
  0x80   :  { %v44_v20 = vpop.permute.xlu0 %43   ;;  %v50_v21 = vpop.permute.xlu1 %49  }
  0x81   :  { %46 = vst.msk [vmem:[#allocation0] sm:$0x1] %vm45_vm7, %v44_v20  }
  0x82   :  { %52 = vst.msk [vmem:[#allocation0] sm:$0x1] %vm51_vm8, %v50_v21  }
  0x84   :  { %v56_v22 = vpop.permute.xlu0 %55   ;;  %v62_v23 = vpop.permute.xlu1 %61  }
  0x85   :  { %58 = vst.msk [vmem:[#allocation0] sm:$0x1] %vm57_vm9, %v56_v22  }
  0x86   :  { %64 = vst.msk [vmem:[#allocation0] sm:$0x1] %vm63_vm10, %v62_v23  }
  0x88   :  { %v68_v24 = vpop.permute.xlu0 %67   ;;  %v74_v25 = vpop.permute.xlu1 %73  }
  0x89   :  { %70 = vst.msk [vmem:[#allocation0] sm:$0x1] %vm69_vm11, %v68_v24  }
  0x8a   :  { %76 = vst.msk [vmem:[#allocation0] sm:$0x1] %vm75_vm12, %v74_v25  }
  0x8c   :  { %v80_v26 = vpop.permute.xlu0 %79  }
  0x8d   :  { %82 = vst.msk [vmem:[#allocation0] sm:$0x1] %vm81_vm13, %v80_v26  }
  0x94   :  { %v86_v27 = vld [vmem:[#allocation0] sm:$0x1] }
  0x95   :  { %88 = vst [vmem:[%s184_s1] sm:$0x1] %v86_v27 }

// kernel: conv2d_model_forward.1
= control target key start
LH: loop header
LB: loop body
LE: loop exit
PB: predicated region body
PF: predicated region fallthrough
CT: control target
= control target key end

     0   :  { %vm37_vm0 = vcmask 523264   ;;  %vm313_vm1 = vcmask 914432   ;;  %vm311_vm2 = vcmask 916480   ;;  %vm687_vm3 = vcmask 519168   ;;  %s2737_s1 = inlined_call_operand.vmem [shape: f32[3,64,112], index: 1, kind: input, shape index: {}]   ;;  %s2738_s0 = inlined_call_operand.vmem [shape: f32[2,16,64], index: 0, kind: input, shape index: {}]   ;;  %s2739_s3 = inlined_call_operand.vmem [shape: f32[3,112,192], index: 3, kind: input, shape index: {}]   ;;  %s2740_s2 = inlined_call_operand.vmem [shape: f32[1,112], index: 2, kind: input, shape index: {}]   ;;  %s2741_s4 = inlined_call_operand.vmem [shape: f32[1,192], index: 4, kind: input, shape index: {}]   ;;  %s2742_s5 = inlined_call_operand.vmem [shape: f32[2,12,192], index: 5, kind: output, shape index: {}]  }
   0x1   :  { %v29_v0 = vld [vmem:[%s2737_s1] sm:$0xff]  ;;  %v30_v1 = vld [vmem:[%s2737_s1 + $0x8] sm:$0xff]  ;;  %v31_v2 = vld [vmem:[%s2737_s1 + $0x10] sm:$0xff] }
   0x2   :  { %v2051_v3 = vpack.c.bf16 %v30_v1, %v29_v0  ;;  %v32_v4 = vld [vmem:[%s2737_s1 + $0x18] sm:$0xff]  ;;  %v33_v6 = vld [vmem:[%s2737_s1 + $0x20] sm:$0xff]  ;;  %v34_v7 = vld [vmem:[%s2737_s1 + $0x28] sm:$0xff] }
   0x3   :  { %v2056_v5 = vpack.c.bf16 %v32_v4, %v31_v2  ;;  %v27_v8 = vld [vmem:[%s2738_s0] sm:$0xff]  ;;  %v2071_v9 = vpack.c.bf16 %v34_v7, %v33_v6  ;;  %v35_v10 = vld [vmem:[%s2737_s1 + $0x30] sm:$0xff]  ;;  %v36_v11 = vld [vmem:[%s2737_s1 + $0x38] sm:$0xff] }
   0x4   :  { %1711 = vmatprep.subr.bf16.mxu0 %v2051_v3  ;;  %1612 = vmatprep.mubr.msk.f32.mxu0 %vm37_vm0, %v27_v8  ;;  %v2081_v12 = vpack.c.bf16 %v36_v11, %v35_v10  ;;  %v1359_v13 = vld [vmem:[%s2737_s1 + $0x40] sm:$0xff]  ;;  %v1360_v14 = vld [vmem:[%s2737_s1 + $0x48] sm:$0xff]  ;;  %v1384_v16 = vld [vmem:[%s2739_s3 + $0xf8] sm:$0xff] }
   0x5   :  { %1713 = vmatpush3.bf16.msra.mxu0 %v2051_v3  ;;  %v1382_v15 = vld [vmem:[%s2739_s3 + $0xe8] sm:$0xff]  ;;  %v1381_v18 = vld [vmem:[%s2739_s3 + $0xe0] sm:$0xff]  ;;  %v1383_v19 = vld [vmem:[%s2739_s3 + $0xf0] sm:$0xff]  ;;  %v2105_v20 = vpack.c.bf16 %v1360_v14, %v1359_v13 }
   0x6   :  { %1715 = vmatprep.subr.bf16.mxu0 %v2056_v5  ;;  %v2096_v17 = vpack.c.bf16 %v1384_v16, %v1382_v15  ;;  %v2107_v21 = vpack.c.bf16 %v1383_v19, %v1381_v18  ;;  %v1386_v22 = vld [vmem:[%s2739_s3 + $0x108] sm:$0xff]  ;;  %v1388_v23 = vld [vmem:[%s2739_s3 + $0x118] sm:$0xff]  ;;  %v1361_v24 = vld [vmem:[%s2737_s1 + $0x50] sm:$0xff] }
   0x7   :  { %v1362_v25 = vld [vmem:[%s2737_s1 + $0x58] sm:$0xff]  ;;  %v2122_v26 = vpack.c.bf16 %v1388_v23, %v1386_v22  ;;  %v1385_v27 = vld [vmem:[%s2739_s3 + $0x100] sm:$0xff]  ;;  %v1387_v28 = vld [vmem:[%s2739_s3 + $0x110] sm:$0xff] }
   0x8   :  { %1787 = vmatprep.subr.bf16.mxu1 %v2096_v17  ;;  %v28_v29 = vld [vmem:[%s2738_s0 + $0x8] sm:$0x3f]  ;;  %v2136_v30 = vpack.c.bf16 %v1387_v28, %v1385_v27  ;;  %v1392_v32 = vld [vmem:[%s2739_s3 + $0x138] sm:$0xff]  ;;  %v2145_v33 = vpack.c.bf16 %v1362_v25, %v1361_v24  ;;  %v1389_v36 = vld [vmem:[%s2739_s3 + $0x120] sm:$0xff] }
   0x9   :  { %1717 = vmatpush3.bf16.msra.mxu0 %v2056_v5  ;;  %1789 = vmatpush1.bf16.msra.mxu1 %v2107_v21  ;;  %v1390_v31 = vld [vmem:[%s2739_s3 + $0x128] sm:$0xff]  ;;  %v1391_v37 = vld [vmem:[%s2739_s3 + $0x130] sm:$0xff]  ;;  %v1363_v38 = vld [vmem:[%s2737_s1 + $0x60] sm:$0xff] }
   0xa   :  { %1719 = vmatprep.subr.bf16.mxu0 %v2071_v9  ;;  %1791 = vmatprep.subr.bf16.mxu1 %v2122_v26  ;;  %v121_v34 = vld [vmem:[%s2738_s0 + $0x1] sm:$0xff]  ;;  %v2150_v35 = vpack.c.bf16 %v1392_v32, %v1390_v31  ;;  %v2169_v41 = vpack.c.bf16 %v1391_v37, %v1389_v36  ;;  %v1396_v42 = vld [vmem:[%s2739_s3 + $0x158] sm:$0xff]  ;;  %v1395_v45 = vld [vmem:[%s2739_s3 + $0x150] sm:$0xff] }
   0xb   :  { %v1364_v39 = vld [vmem:[%s2737_s1 + $0x68] sm:$0xff]  ;;  %v1393_v44 = vld [vmem:[%s2739_s3 + $0x140] sm:$0xff]  ;;  %v1365_v47 = vld [vmem:[%s2737_s1 + $0x70] sm:$0xff] }
   0xc   :  { %v1394_v40 = vld [vmem:[%s2739_s3 + $0x148] sm:$0xff]  ;;  %v2185_v46 = vpack.c.bf16 %v1364_v39, %v1363_v38  ;;  %v1366_v48 = vld [vmem:[%s2737_s1 + $0x78] sm:$0xff]  ;;  %v2195_v49 = vpack.c.bf16 %v1395_v45, %v1393_v44  ;;  %v1369_v51 = vld [vmem:[%s2737_s1 + $0x80] sm:$0xff] }
   0xd   :  { %1721 = vmatpush3.bf16.msra.mxu0 %v2071_v9  ;;  %1793 = vmatpush1.bf16.msra.mxu1 %v2136_v30  ;;  %v2176_v43 = vpack.c.bf16 %v1396_v42, %v1394_v40  ;;  %v2200_v50 = vpack.c.bf16 %v1366_v48, %v1365_v47  ;;  %v1370_v52 = vld [vmem:[%s2737_s1 + $0x88] sm:$0xff]  ;;  %v1371_v54 = vld [vmem:[%s2737_s1 + $0x90] sm:$0xff]  ;;  %v1372_v55 = vld [vmem:[%s2737_s1 + $0x98] sm:$0xff] }
   0xe   :  { %1723 = vmatprep.subr.bf16.mxu0 %v2081_v12  ;;  %1795 = vmatprep.subr.bf16.mxu1 %v2150_v35  ;;  %v2211_v53 = vpack.c.bf16 %v1370_v52, %v1369_v51  ;;  %v122_v56 = vld [vmem:[%s2738_s0 + $0x9] sm:$0x3f]  ;;  %v2224_v57 = vpack.c.bf16 %v1372_v55, %v1371_v54  ;;  %v1373_v59 = vld [vmem:[%s2737_s1 + $0xa0] sm:$0xff]  ;;  %v1375_v62 = vld [vmem:[%s2737_s1 + $0xb0] sm:$0xff] }
   0xf   :  { %v215_v58 = vld [vmem:[%s2738_s0 + $0x2] sm:$0xff]  ;;  %v1376_v63 = vld [vmem:[%s2737_s1 + $0xb8] sm:$0xff]  ;;  %v331_v7 = vld [vmem:[%s2739_s3 + $0x10] sm:$0xff] }
  0x10   :  { %v1374_v60 = vld [vmem:[%s2737_s1 + $0xa8] sm:$0xff]  ;;  %v2249_v0 = vpack.c.bf16 %v1376_v63, %v1375_v62  ;;  %v332_v2 = vld [vmem:[%s2739_s3 + $0x18] sm:$0xff]  ;;  %v329_v6 = vld [vmem:[%s2739_s3] sm:$0xff] }
  0x11   :  { %1725 = vmatpush3.bf16.msra.mxu0 %v2081_v12  ;;  %1797 = vmatpush1.bf16.msra.mxu1 %v2169_v41  ;;  %v2239_v61 = vpack.c.bf16 %v1374_v60, %v1373_v59  ;;  %v330_v1 = vld [vmem:[%s2739_s3 + $0x8] sm:$0xff]  ;;  %v336_v10 = vld [vmem:[%s2739_s3 + $0x38] sm:$0xff]  ;;  %v2277_v13 = vpack.c.bf16 %v331_v7, %v329_v6  ;;  %v333_v15 = vld [vmem:[%s2739_s3 + $0x20] sm:$0xff] }
  0x12   :  { %1727 = vmatprep.subr.bf16.mxu0 %v2105_v20  ;;  %1799 = vmatprep.subr.bf16.mxu1 %v2176_v43  ;;  %v2259_v4 = vpack.c.bf16 %v332_v2, %v330_v1  ;;  %v334_v8 = vld [vmem:[%s2739_s3 + $0x28] sm:$0xff]  ;;  %v335_v16 = vld [vmem:[%s2739_s3 + $0x30] sm:$0xff]  ;;  %v340_v19 = vld [vmem:[%s2739_s3 + $0x58] sm:$0xff] }
  0x13   :  { %v216_v11 = vld [vmem:[%s2738_s0 + $0xa] sm:$0x3f]  ;;  %v2280_v14 = vpack.c.bf16 %v336_v10, %v334_v8  ;;  %v2296_v22 = vpack.c.bf16 %v335_v16, %v333_v15  ;;  %v337_v24 = vld [vmem:[%s2739_s3 + $0x40] sm:$0xff]  ;;  %v339_v25 = vld [vmem:[%s2739_s3 + $0x50] sm:$0xff] }
  0x14   :  { %1613 = vmatmul.mubr.msk.f32.vlgmr.msra.gmra.mrb[0].mxu0 %vm37_vm0, %v28_v29  ;;  %v338_v18 = vld [vmem:[%s2739_s3 + $0x48] sm:$0xff]  ;;  %v344_v28 = vld [vmem:[%s2739_s3 + $0x78] sm:$0xff]  ;;  %v2314_v29 = vpack.c.bf16 %v339_v25, %v337_v24  ;;  %v341_v32 = vld [vmem:[%s2739_s3 + $0x60] sm:$0xff]  ;;  %v2011_v25 = vmov 0.0  }
  0x15   :  { %1729 = vmatpush3.bf16.msra.mxu0 %v2105_v20  ;;  %1631 = vmatprep.mubr.msk.f32.mxu0 %vm37_vm0, %v121_v34  ;;  %v2299_v23 = vpack.c.bf16 %v340_v19, %v338_v18  ;;  %v342_v27 = vld [vmem:[%s2739_s3 + $0x68] sm:$0xff]  ;;  %v343_v34 = vld [vmem:[%s2739_s3 + $0x70] sm:$0xff]  ;;  %v348_v38 = vld [vmem:[%s2739_s3 + $0x98] sm:$0xff] }
  0x16   :  { %1731 = vmatprep.subr.bf16.mxu0 %v2145_v33  ;;  %1801 = vmatpush1.bf16.msra.mxu1 %v2195_v49  ;;  %v2317_v31 = vpack.c.bf16 %v344_v28, %v342_v27  ;;  %v2326_v36 = vpack.c.bf16 %v343_v34, %v341_v32  ;;  %v346_v37 = vld [vmem:[%s2739_s3 + $0x88] sm:$0xff]  ;;  %v1400_v42 = vld [vmem:[%s2739_s3 + $0x178] sm:$0xff]  ;;  %v345_v44 = vld [vmem:[%s2739_s3 + $0x80] sm:$0xff] }
  0x17   :  { %v1398_v39 = vld [vmem:[%s2739_s3 + $0x168] sm:$0xff]  ;;  %v2339_v40 = vpack.c.bf16 %v348_v38, %v346_v37  ;;  %v347_v45 = vld [vmem:[%s2739_s3 + $0x90] sm:$0xff]  ;;  %v1397_v51 = vld [vmem:[%s2739_s3 + $0x160] sm:$0xff]  ;;  %545 = vmatprep.mubr.f32.mxu1 %v2011_v25 }
  0x18   :  { %v2350_v47 = vpack.c.bf16 %v1400_v42, %v1398_v39  ;;  %v2352_v48 = vpack.c.bf16 %v347_v45, %v345_v44  ;;  %v1399_v52 = vld [vmem:[%s2739_s3 + $0x170] sm:$0xff]  ;;  %v350_v55 = vld [vmem:[%s2739_s3 + $0xa8] sm:$0xff]  ;;  %v1404_v60 = vld [vmem:[%s2739_s3 + $0x198] sm:$0xff] }
  0x19   :  { %1733 = vmatpush3.bf16.msra.mxu0 %v2145_v33  ;;  %v2361_v54 = vpack.c.bf16 %v1399_v52, %v1397_v51  ;;  %v349_v62 = vld [vmem:[%s2739_s3 + $0xa0] sm:$0xff]  ;;  %v351_v63 = vld [vmem:[%s2739_s3 + $0xb0] sm:$0xff]  ;;  %v354_v10 = vld [vmem:[%s2739_s3 + $0xc8] sm:$0xff] }
  0x1a   :  { %1735 = vmatprep.subr.bf16.mxu0 %v2185_v46  ;;  %1803 = vmatprep.subr.bf16.mxu1 %v2350_v47  ;;  %v2388_v2 = vpack.c.bf16 %v351_v63, %v349_v62  ;;  %v1401_v6 = vld [vmem:[%s2739_s3 + $0x180] sm:$0xff]  ;;  %v1403_v7 = vld [vmem:[%s2739_s3 + $0x190] sm:$0xff]  ;;  %v1406_v15 = vld [vmem:[%s2739_s3 + $0x1a8] sm:$0xff] }
  0x1b   :  { %1805 = vmatpush1.bf16.msra.mxu1 %v2361_v54  ;;  %v2397_v8 = vpack.c.bf16 %v1403_v7, %v1401_v6  ;;  %v1408_v18 = vld [vmem:[%s2739_s3 + $0x1b8] sm:$0xff]  ;;  %v353_v19 = vld [vmem:[%s2739_s3 + $0xc0] sm:$0xff]  ;;  %v355_v24 = vld [vmem:[%s2739_s3 + $0xd0] sm:$0xff] }
  0x1c   :  { %v2423_v27 = vpack.c.bf16 %v1408_v18, %v1406_v15  ;;  %v2425_v28 = vpack.c.bf16 %v355_v24, %v353_v19  ;;  %v1405_v32 = vld [vmem:[%s2739_s3 + $0x1a0] sm:$0xff]  ;;  %v1407_v34 = vld [vmem:[%s2739_s3 + $0x1b0] sm:$0xff]  ;;  %v1412_v37 = vld [vmem:[%s2739_s3 + $0x1c8] sm:$0xff] }
  0x1d   :  { %1737 = vmatpush3.bf16.msra.mxu0 %v2185_v46  ;;  %v2438_v38 = vpack.c.bf16 %v1407_v34, %v1405_v32  ;;  %v1414_v39 = vld [vmem:[%s2739_s3 + $0x1d8] sm:$0xff]  ;;  %v2453_v44 = vld [vmem:[%s2740_s2] ss:$0 sm:$0xff]  ;;  %v1413_v62 = vld [vmem:[%s2739_s3 + $0x1d0] sm:$0xff] }
  0x1e   :  { %1739 = vmatprep.subr.bf16.mxu0 %v2200_v50  ;;  %v2445_v42 = vpack.c.bf16 %v1414_v39, %v1412_v37  ;;  %v1416_v63 = vld [vmem:[%s2739_s3 + $0x1e8] sm:$0xff]  ;;  %v1418_v6 = vld [vmem:[%s2739_s3 + $0x1f8] sm:$0xff]  ;;  %v1419_v39 = vld [vmem:[%s2739_s3 + $0x200] sm:$0xff] }
  0x1f   :  { %v1420_v15 = vld [vmem:[%s2739_s3 + $0x208] sm:$0xff]  ;;  %v2482_v24 = vpack.c.bf16 %v1418_v6, %v1416_v63  ;;  %v1422_v32 = vld [vmem:[%s2739_s3 + $0x218] sm:$0xff]  ;;  %v1425_v63 = vld [vmem:[%s2739_s3 + $0x230] sm:$0xff] }
  0x20   :  { %v2495_v37 = vpack.c.bf16 %v1422_v32, %v1420_v15  ;;  %v1430_v6 = vld [vmem:[%s2739_s3 + $0x258] sm:$0xff]  ;;  %v1427_v15 = vld [vmem:[%s2739_s3 + $0x240] sm:$0xff] }
  0x21   :  { %1741 = vmatpush3.bf16.msra.mxu0 %v2200_v50 }
  0x22   :  { %1743 = vmatprep.subr.bf16.mxu0 %v2211_v53 }
  0x24   :  { %1632 = vmatmul.mubr.msk.f32.vlgmr.msra.gmra.mrb[0].mxu0 %vm37_vm0, %v122_v56  ;;  %v352_v56 = vld [vmem:[%s2739_s3 + $0xb8] sm:$0xff] }
  0x25   :  { %1745 = vmatpush3.bf16.msra.mxu0 %v2211_v53  ;;  %1650 = vmatprep.mubr.msk.f32.mxu0 %vm37_vm0, %v215_v58  ;;  %v1402_v58 = vld [vmem:[%s2739_s3 + $0x188] sm:$0xff]  ;;  %v2375_v59 = vpack.c.bf16 %v352_v56, %v350_v55 }
  0x26   :  { %1747 = vmatprep.subr.bf16.mxu0 %v2224_v57  ;;  %v2386_v1 = vpack.c.bf16 %v1404_v60, %v1402_v58  ;;  %v1411_v60 = vld [vmem:[%s2739_s3 + $0x1c0] sm:$0xff] }
  0x27   :  { %v2471_v7 = vpack.c.bf16 %v1413_v62, %v1411_v60  ;;  %v1423_v62 = vld [vmem:[%s2739_s3 + $0x220] sm:$0xff] }
  0x28   :  { %1807 = vmatprep.subr.bf16.mxu1 %v2386_v1 }
  0x29   :  { %1749 = vmatpush3.bf16.msra.mxu0 %v2224_v57  ;;  %1809 = vmatpush1.bf16.msra.mxu1 %v2397_v8 }
  0x2a   :  { %1751 = vmatprep.subr.bf16.mxu0 %v2239_v61  ;;  %1811 = vmatprep.subr.bf16.mxu1 %v2423_v27 }
  0x2d   :  { %1753 = vmatpush3.bf16.msra.mxu0 %v2239_v61  ;;  %1813 = vmatpush1.bf16.msra.mxu1 %v2438_v38 }
  0x2e   :  { %1755 = vmatprep.subr.bf16.mxu0 %v2249_v0  ;;  %1815 = vmatprep.subr.bf16.mxu1 %v2445_v42 }
  0x31   :  { %1757 = vmatpush3.bf16.msra.mxu0 %v2249_v0 }
  0x32   :  { %1759 = vmatprep.subr.bf16.mxu0 %v2259_v4 }
  0x34   :  { %1651 = vmatmul.mubr.msk.f32.vlgmr.msra.gmra.mrb[0].mxu0 %vm37_vm0, %v216_v11  ;;  %v356_v11 = vld [vmem:[%s2739_s3 + $0xd8] sm:$0xff] }
  0x35   :  { %1761 = vmatpush1.bf16.msra.mxu0 %v2277_v13  ;;  %v2411_v16 = vpack.c.bf16 %v356_v11, %v354_v10  ;;  %427 = vmatprep.mubr.f32.mxu0 %v2011_v25  ;;  %v1415_v10 = vld [vmem:[%s2739_s3 + $0x1e0] sm:$0xff]  ;;  %v1417_v11 = vld [vmem:[%s2739_s3 + $0x1f0] sm:$0xff] }
  0x36   :  { %1763 = vmatprep.subr.bf16.mxu0 %v2280_v14  ;;  %v2491_v34 = vpack.c.bf16 %v1417_v11, %v1415_v10  ;;  %v2540_v10 = vpack.c.bf16 %v1425_v63, %v1423_v62  ;;  %v1435_v63 = vld [vmem:[%s2739_s3 + $0x280] sm:$0xff] }
  0x39   :  { %1765 = vmatpush1.bf16.msra.mxu0 %v2296_v22 }
  0x3a   :  { %1767 = vmatprep.subr.bf16.mxu0 %v2299_v23 }
  0x3d   :  { %1769 = vmatpush1.bf16.msra.mxu0 %v2314_v29 }
  0x3e   :  { %1771 = vmatprep.subr.bf16.mxu0 %v2317_v31 }
  0x41   :  { %1773 = vmatpush1.bf16.msra.mxu0 %v2326_v36 }
  0x42   :  { %1775 = vmatprep.subr.bf16.mxu0 %v2339_v40 }
  0x45   :  { %1777 = vmatpush1.bf16.msra.mxu0 %v2352_v48 }
  0x46   :  { %1779 = vmatprep.subr.bf16.mxu0 %v2375_v59 }
  0x49   :  { %1781 = vmatpush1.bf16.msra.mxu0 %v2388_v2 }
  0x4a   :  { %1783 = vmatprep.subr.bf16.mxu0 %v2411_v16 }
  0x4d   :  { %1785 = vmatpush1.bf16.msra.mxu0 %v2425_v28 }
  0x4e   :  { %1843 = vmatprep.subr.bf16.mxu0 %v2051_v3 }
 0x107   :  { %v1652_v45 = vpop.f32.mrb[0].mxu0 }
 0x108   :  { %v1974_v51 = vadd.f32 %v1652_v45, %v2453_v44  ;;  %v298_v52 = vpop.f32.mrb[1].mxu0  ;;  %v1421_v45 = vld [vmem:[%s2739_s3 + $0x210] sm:$0xff] }
 0x109   :  { %v1975_v55 = vadd.f32 %v2453_v44, %v298_v52 }
 0x10a   :  { %v310_v56 = vmax.f32 %v1974_v51, 0.0 }
 0x10b   :  { %v309_v58 = vmax.f32 %v1975_v55, 0.0  ;;  %v1426_v55 = vld [vmem:[%s2739_s3 + $0x238] sm:$0xff] }
 0x10c   :  { %314 = vst.msk [vmem:[#allocation2 + $0x8] sm:$0x3f] %vm313_vm1, %v310_v56  ;;  %v1442_v56 = vld [vmem:[%s2738_s0 + $0x10] sm:$0xff] }
 0x10d   :  { %312 = vst.msk [vmem:[#allocation2] sm:$0xff] %vm311_vm2, %v309_v58  ;;  %v2518_v58 = vpack.c.bf16 %v1421_v45, %v1419_v39  ;;  %v1443_v39 = vld [vmem:[%s2738_s0 + $0x18] sm:$0x3f] }
 0x113   :  { %v328_v51 = vld [vmem:[#allocation2 + $0x8] sm:$0xf] }
 0x114   :  { %v327_v18 = vld [vmem:[#allocation2] sm:$0xff]  ;;  %v445_v52 = vld [vmem:[#allocation2 + $0x9] sm:$0xf] }
 0x115   :  { %v444_v19 = vld [vmem:[#allocation2 + $0x1] sm:$0xff]  ;;  %1379 = vmatmul.mubr.msk.f32.vlgmr.msra.gmra.mrb[2].mxu0 %vm311_vm2, %v327_v18  ;;  %v1429_v18 = vld [vmem:[%s2739_s3 + $0x250] sm:$0xff] }
 0x116   :  { %1409 = vmatmul.mubr.msk.f32.vlgmr.msra.gmra.mrb[0].mxu1 %vm311_vm2, %v444_v19  ;;  %1845 = vmatpush3.bf16.msra.mxu0 %v2051_v3  ;;  %v1424_v3 = vld [vmem:[%s2739_s3 + $0x228] sm:$0xff]  ;;  %v1434_v19 = vld [vmem:[%s2739_s3 + $0x278] sm:$0xff]  ;;  %v2560_v32 = vpack.c.bf16 %v1429_v18, %v1427_v15 }
 0x117   :  { %1817 = vmatpush1.bf16.msra.mxu1 %v2471_v7  ;;  %433 = vmatprep.mubr.f32.mxu0 %v2011_v25  ;;  %v2522_v60 = vpack.c.bf16 %v1426_v55, %v1424_v3  ;;  %v1431_v3 = vld [vmem:[%s2739_s3 + $0x260] sm:$0xff]  ;;  %v1446_v55 = vld [vmem:[%s2738_s0 + $0x11] sm:$0xff] }
 0x118   :  { %551 = vmatprep.mubr.f32.mxu1 %v2011_v25  ;;  %1819 = vmatprep.subr.bf16.mxu1 %v2482_v24 }
 0x119   :  { %1847 = vmatprep.subr.bf16.mxu0 %v2056_v5  ;;  %1380 = vmatmul.mubr.msk.f32.gmra.mrb[4].mxu0 %vm311_vm2, %v328_v51  ;;  %v1436_v51 = vld [vmem:[%s2739_s3 + $0x288] sm:$0xff] }
 0x11a   :  { %1410 = vmatmul.mubr.msk.f32.gmra.mrb[2].mxu1 %vm311_vm2, %v445_v52  ;;  %1849 = vmatpush3.bf16.msra.mxu0 %v2056_v5  ;;  %v1428_v5 = vld [vmem:[%s2739_s3 + $0x248] sm:$0xff]  ;;  %v1438_v52 = vld [vmem:[%s2739_s3 + $0x298] sm:$0xff] }
 0x11b   :  { %1821 = vmatpush1.bf16.msra.mxu1 %v2491_v34  ;;  %1851 = vmatprep.subr.bf16.mxu0 %v2071_v9  ;;  %v2544_v11 = vpack.c.bf16 %v1430_v6, %v1428_v5  ;;  %v2591_v62 = vpack.c.bf16 %v1438_v52, %v1436_v51  ;;  %v1437_v5 = vld [vmem:[%s2739_s3 + $0x290] sm:$0xff]  ;;  %v562_v6 = vld [vmem:[#allocation2 + $0x2] sm:$0xff] }
 0x11c   :  { %1823 = vmatprep.subr.bf16.mxu1 %v2495_v37  ;;  %1669 = vmatprep.mubr.msk.f32.mxu0 %vm37_vm0, %v1442_v56 }
 0x11d   :  { %663 = vmatprep.mubr.f32.mxu1 %v2011_v25 }
 0x11e   :  { %1853 = vmatpush3.bf16.msra.mxu0 %v2071_v9  ;;  %v1432_v9 = vld [vmem:[%s2739_s3 + $0x268] sm:$0xff] }
 0x11f   :  { %1825 = vmatpush1.bf16.msra.mxu1 %v2518_v58  ;;  %1855 = vmatprep.subr.bf16.mxu0 %v2081_v12  ;;  %v2567_v45 = vpack.c.bf16 %v1434_v19, %v1432_v9 }
 0x120   :  { %1827 = vmatprep.subr.bf16.mxu1 %v2522_v60 }
 0x122   :  { %1857 = vmatpush3.bf16.msra.mxu0 %v2081_v12  ;;  %v1433_v12 = vld [vmem:[%s2739_s3 + $0x270] sm:$0xff] }
 0x123   :  { %1829 = vmatpush1.bf16.msra.mxu1 %v2540_v10  ;;  %1859 = vmatprep.subr.bf16.mxu0 %v2105_v20  ;;  %v2587_v56 = vpack.c.bf16 %v1433_v12, %v1431_v3 }
 0x124   :  { %1831 = vmatprep.subr.bf16.mxu1 %v2544_v11 }
 0x125   :  { %1670 = vmatmul.mubr.msk.f32.vlgmr.msra.gmra.mrb[6].mxu0 %vm37_vm0, %v1443_v39 }
 0x126   :  { %1861 = vmatpush3.bf16.msra.mxu0 %v2105_v20  ;;  %1688 = vmatprep.mubr.msk.f32.mxu0 %vm37_vm0, %v1446_v55  ;;  %v2602_v20 = vpack.c.bf16 %v1437_v5, %v1435_v63 }
 0x127   :  { %1833 = vmatpush1.bf16.msra.mxu1 %v2560_v32  ;;  %1863 = vmatprep.subr.bf16.mxu0 %v2145_v33 }
 0x128   :  { %1835 = vmatprep.subr.bf16.mxu1 %v2567_v45 }
 0x12a   :  { %1865 = vmatpush3.bf16.msra.mxu0 %v2145_v33  ;;  %v1447_v33 = vld [vmem:[%s2738_s0 + $0x19] sm:$0x3f] }
 0x12b   :  { %1837 = vmatpush1.bf16.msra.mxu1 %v2587_v56  ;;  %1867 = vmatprep.subr.bf16.mxu0 %v2185_v46 }
 0x12c   :  { %1839 = vmatprep.subr.bf16.mxu1 %v2591_v62 }
 0x12e   :  { %1869 = vmatpush3.bf16.msra.mxu0 %v2185_v46  ;;  %v1458_v46 = vld [vmem:[%s2738_s0 + $0x12] sm:$0xff] }
 0x12f   :  { %1841 = vmatpush1.bf16.msra.mxu1 %v2602_v20  ;;  %1871 = vmatprep.subr.bf16.mxu0 %v2200_v50 }
 0x130   :  { %1891 = vmatprep.subr.bf16.mxu1 %v2259_v4  ;;  %v563_v4 = vld [vmem:[#allocation2 + $0xa] sm:$0xf] }
 0x132   :  { %1439 = vmatmul.mubr.msk.f32.vlgmr.msra.gmra.mrb[0].mxu1 %vm311_vm2, %v562_v6  ;;  %1873 = vmatpush3.bf16.msra.mxu0 %v2200_v50  ;;  %v1459_v50 = vld [vmem:[%s2738_s0 + $0x1a] sm:$0x3f] }
 0x133   :  { %669 = vmatprep.mubr.f32.mxu1 %v2011_v25  ;;  %1875 = vmatprep.subr.bf16.mxu0 %v2211_v53 }
 0x134   :  { %1893 = vmatpush1.bf16.msra.mxu1 %v2277_v13  ;;  %v317_v13 = vlaneseq }
 0x135   :  { %1895 = vmatprep.subr.bf16.mxu1 %v2280_v14  ;;  %1689 = vmatmul.mubr.msk.f32.vlgmr.msra.gmra.mrb[6].mxu0 %vm37_vm0, %v1447_v33 }
 0x136   :  { %1440 = vmatmul.mubr.msk.f32.gmra.mrb[2].mxu1 %vm311_vm2, %v563_v4  ;;  %1877 = vmatpush3.bf16.msra.mxu0 %v2211_v53  ;;  %v2649_v14 = vshrl.u32 %v317_v13, 7 }
 0x137   :  { %1707 = vmatprep.mubr.msk.f32.mxu0 %vm37_vm0, %v1458_v46  ;;  %1879 = vmatprep.subr.bf16.mxu0 %v2224_v57 }
 0x138   :  { %1897 = vmatpush1.bf16.msra.mxu1 %v2296_v22  ;;  %1092 = vmatprep.mubr.f32.mxu1 %v2011_v25  ;;  %v319_v22 = vsub.s32 0, %v2649_v14 }
 0x139   :  { %1899 = vmatprep.subr.bf16.mxu1 %v2299_v23  ;;  %v315_v23 = vld [vmem:[%s2741_s4] sm:$0x3] }
 0x13a   :  { %1881 = vmatpush3.bf16.msra.mxu0 %v2224_v57 }
 0x13b   :  { %1883 = vmatprep.subr.bf16.mxu0 %v2239_v61 }
 0x13c   :  { %1901 = vmatpush1.bf16.msra.mxu1 %v2314_v29  ;;  %v323_v29 = vsub.s32 1, %v2649_v14 }
 0x13d   :  { %1903 = vmatprep.subr.bf16.mxu1 %v2317_v31  ;;  %v320_v31 = vrot.slane %v315_v23, %v319_v22 }
 0x13e   :  { %1885 = vmatpush3.bf16.msra.mxu0 %v2239_v61 }
 0x13f   :  { %1887 = vmatprep.subr.bf16.mxu0 %v2249_v0 }
 0x140   :  { %1905 = vmatpush1.bf16.msra.mxu1 %v2326_v36 }
 0x141   :  { %1907 = vmatprep.subr.bf16.mxu1 %v2339_v40 }
 0x142   :  { %1889 = vmatpush3.bf16.msra.mxu0 %v2249_v0 }
 0x144   :  { %1909 = vmatpush1.bf16.msra.mxu1 %v2352_v48 }
 0x145   :  { %1911 = vmatprep.subr.bf16.mxu1 %v2375_v59  ;;  %1708 = vmatmul.mubr.msk.f32.vlgmr.msra.gmra.mrb[6].mxu0 %vm37_vm0, %v1459_v50 }
 0x148   :  { %1913 = vmatpush1.bf16.msra.mxu1 %v2388_v2 }
 0x149   :  { %1915 = vmatprep.subr.bf16.mxu1 %v2411_v16 }
 0x14c   :  { %1917 = vmatpush1.bf16.msra.mxu1 %v2425_v28 }
 0x14d   :  { %1919 = vmatprep.subr.bf16.mxu1 %v2096_v17  ;;  %v324_v17 = vrot.slane %v315_v23, %v323_v29 }
 0x1e8   :  { %v429_v53 = vpop.f32.mrb[2].mxu0 }
 0x1e9   :  { %v431_v57 = vpop.f32.mrb[3].mxu0  ;;  %v440_v36 = vadd.f32 %v429_v53, %v320_v31 }
 0x1ea   :  { %v441_v40 = vadd.f32 %v431_v57, %v324_v17 }
 0x1ec   :  { %v435_v61 = vpop.f32.mrb[4].mxu0 }
 0x1ed   :  { %v437_v0 = vpop.f32.mrb[5].mxu0  ;;  %v442_v28 = vadd.f32 %v435_v61, %v320_v31 }
 0x1ee   :  { %v443_v18 = vadd.f32 %v437_v0, %v324_v17 }
 0x205   :  { %v665_v48 = vpop.f32.mrb[0].mxu1 }
 0x206   :  { %v1977_v59 = vadd.f32 %v665_v48, %v440_v36  ;;  %v667_v2 = vpop.f32.mrb[1].mxu1 }
 0x207   :  { %v1979_v16 = vadd.f32 %v667_v2, %v441_v40 }
 0x208   :  { %v680_v15 = vmax.f32 %v1977_v59, 0.0 }
 0x209   :  { %v681_v9 = vmax.f32 %v1979_v16, 0.0  ;;  %v671_v19 = vpop.f32.mrb[2].mxu1 }
 0x20a   :  { %684 = vst [vmem:[%s2742_s5] sm:$0xff] %v680_v15  ;;  %v1981_v39 = vadd.f32 %v671_v19, %v442_v28  ;;  %v673_v3 = vpop.f32.mrb[3].mxu1 }
 0x20b   :  { %685 = vst.msk [vmem:[%s2742_s5 + $0x8] sm:$0xff] %vm37_vm0, %v681_v9  ;;  %v1983_v12 = vadd.f32 %v673_v3, %v443_v18 }
 0x20c   :  { %v682_v51 = vmax.f32 %v1981_v39, 0.0 }
 0x20d   :  { %v683_v52 = vmax.f32 %v1983_v12, 0.0 }
 0x20e   :  { %686 = vst [vmem:[%s2742_s5 + $0x10] sm:$0xf] %v682_v51 }
 0x20f   :  { %688 = vst.msk [vmem:[%s2742_s5 + $0x18] sm:$0xf] %vm687_vm3, %v683_v52 }
 0x218   :  { %v1709_v55 = vpop.f32.mrb[6].mxu0 }
 0x219   :  { %v1984_v63 = vadd.f32 %v1709_v55, %v2453_v44  ;;  %v965_v5 = vpop.f32.mrb[7].mxu0 }
 0x21a   :  { %v1985_v6 = vadd.f32 %v2453_v44, %v965_v5 }
 0x21b   :  { %v977_v33 = vmax.f32 %v1984_v63, 0.0 }
 0x21c   :  { %v976_v46 = vmax.f32 %v1985_v6, 0.0 }
 0x21d   :  { %979 = vst.msk [vmem:[#allocation2 + $0x8] sm:$0x3f] %vm313_vm1, %v977_v33 }
 0x21e   :  { %978 = vst.msk [vmem:[#allocation2] sm:$0xff] %vm311_vm2, %v976_v46 }
 0x224   :  { %v993_v50 = vld [vmem:[#allocation2 + $0x8] sm:$0xf] }
 0x225   :  { %v992_v4 = vld [vmem:[#allocation2] sm:$0xff] }
 0x226   :  { %1470 = vmatmul.mubr.msk.f32.vlgmr.msra.gmra.mrb[4].mxu1 %vm311_vm2, %v992_v4 }
 0x227   :  { %1921 = vmatpush1.bf16.msra.mxu1 %v2107_v21  ;;  %1098 = vmatprep.mubr.f32.mxu1 %v2011_v25  ;;  %v1109_v21 = vld [vmem:[#allocation2 + $0x1] sm:$0xff] }
 0x228   :  { %1923 = vmatprep.subr.bf16.mxu1 %v2122_v26  ;;  %v1110_v26 = vld [vmem:[#allocation2 + $0x9] sm:$0xf] }
 0x22a   :  { %1471 = vmatmul.mubr.msk.f32.gmra.mrb[6].mxu1 %vm311_vm2, %v993_v50 }
 0x22b   :  { %1925 = vmatpush1.bf16.msra.mxu1 %v2136_v30  ;;  %1209 = vmatprep.mubr.f32.mxu1 %v2011_v25  ;;  %v1226_v30 = vld [vmem:[#allocation2 + $0x2] sm:$0xff] }
 0x22c   :  { %1927 = vmatprep.subr.bf16.mxu1 %v2150_v35  ;;  %v1227_v35 = vld [vmem:[#allocation2 + $0xa] sm:$0xf] }
 0x22f   :  { %1929 = vmatpush1.bf16.msra.mxu1 %v2169_v41  ;;  %v980_v41 = vld [vmem:[%s2741_s4] sm:$0x3] }
 0x230   :  { %1931 = vmatprep.subr.bf16.mxu1 %v2176_v43  ;;  %v985_v43 = vrot.slane %v980_v41, %v319_v22 }
 0x233   :  { %1933 = vmatpush1.bf16.msra.mxu1 %v2195_v49  ;;  %v989_v49 = vrot.slane %v980_v41, %v323_v29 }
 0x234   :  { %1935 = vmatprep.subr.bf16.mxu1 %v2350_v47 }
 0x237   :  { %1937 = vmatpush1.bf16.msra.mxu1 %v2361_v54 }
 0x238   :  { %1939 = vmatprep.subr.bf16.mxu1 %v2386_v1 }
 0x23b   :  { %1941 = vmatpush1.bf16.msra.mxu1 %v2397_v8 }
 0x23c   :  { %1943 = vmatprep.subr.bf16.mxu1 %v2423_v27 }
 0x23f   :  { %1945 = vmatpush1.bf16.msra.mxu1 %v2438_v38 }
 0x240   :  { %1947 = vmatprep.subr.bf16.mxu1 %v2445_v42 }
 0x242   :  { %1500 = vmatmul.mubr.msk.f32.vlgmr.msra.gmra.mrb[4].mxu1 %vm311_vm2, %v1109_v21 }
 0x243   :  { %1949 = vmatpush1.bf16.msra.mxu1 %v2471_v7  ;;  %1215 = vmatprep.mubr.f32.mxu1 %v2011_v25 }
 0x244   :  { %1951 = vmatprep.subr.bf16.mxu1 %v2482_v24 }
 0x246   :  { %1501 = vmatmul.mubr.msk.f32.gmra.mrb[6].mxu1 %vm311_vm2, %v1110_v26 }
 0x247   :  { %1953 = vmatpush1.bf16.msra.mxu1 %v2491_v34  ;;  %1326 = vmatprep.mubr.f32.mxu1 %v2011_v25 }
 0x248   :  { %1955 = vmatprep.subr.bf16.mxu1 %v2495_v37 }
 0x24b   :  { %1957 = vmatpush1.bf16.msra.mxu1 %v2518_v58 }
 0x24c   :  { %1959 = vmatprep.subr.bf16.mxu1 %v2522_v60 }
 0x24f   :  { %1961 = vmatpush1.bf16.msra.mxu1 %v2540_v10 }
 0x250   :  { %1963 = vmatprep.subr.bf16.mxu1 %v2544_v11 }
 0x253   :  { %1965 = vmatpush1.bf16.msra.mxu1 %v2560_v32 }
 0x254   :  { %1967 = vmatprep.subr.bf16.mxu1 %v2567_v45 }
 0x257   :  { %1969 = vmatpush1.bf16.msra.mxu1 %v2587_v56 }
 0x258   :  { %1971 = vmatprep.subr.bf16.mxu1 %v2591_v62 }
 0x25b   :  { %1973 = vmatpush1.bf16.msra.mxu1 %v2602_v20 }
 0x25e   :  { %1530 = vmatmul.mubr.msk.f32.vlgmr.msra.gmra.mrb[4].mxu1 %vm311_vm2, %v1226_v30 }
 0x25f   :  { %1332 = vmatprep.mubr.f32.mxu1 %v2011_v25 }
 0x262   :  { %1531 = vmatmul.mubr.msk.f32.gmra.mrb[6].mxu1 %vm311_vm2, %v1227_v35 }
 0x331   :  { %v1328_v47 = vpop.f32.mrb[4].mxu1 }
 0x332   :  { %v1986_v54 = vadd.f32 %v1328_v47, %v985_v43  ;;  %v1330_v1 = vpop.f32.mrb[5].mxu1 }
 0x333   :  { %v1987_v8 = vadd.f32 %v1330_v1, %v989_v49 }
 0x334   :  { %v1343_v27 = vmax.f32 %v1986_v54, 0.0 }
 0x335   :  { %v1344_v38 = vmax.f32 %v1987_v8, 0.0  ;;  %v1334_v25 = vpop.f32.mrb[6].mxu1 }
 0x336   :  { %1532 = vst [vmem:[%s2742_s5 + $0x20] sm:$0xff] %v1343_v27  ;;  %v1988_v42 = vadd.f32 %v1334_v25, %v985_v43  ;;  %v1336_v44 = vpop.f32.mrb[7].mxu1 }
 0x337   :  { %1533 = vst.msk [vmem:[%s2742_s5 + $0x28] sm:$0xff] %vm37_vm0, %v1344_v38  ;;  %v1989_v7 = vadd.f32 %v1336_v44, %v989_v49 }
 0x338   :  { %v1345_v24 = vmax.f32 %v1988_v42, 0.0 }
 0x339   :  { %v1346_v34 = vmax.f32 %v1989_v7, 0.0 }
 0x33a   :  { %1534 = vst [vmem:[%s2742_s5 + $0x30] sm:$0xf] %v1345_v24 }
 0x33b   :  { %1535 = vst.msk [vmem:[%s2742_s5 + $0x38] sm:$0xf] %vm687_vm3, %v1346_v34 }

</bundles_post_ra>
